<compile_context>
chip_gen: v7x
topology: tpu7x:2x2x1
jax: 0.10.0
libtpu: 0.0.40
codegen_flags: <defaults>
</compile_context>

<pallas_src>
import jax
import jax.numpy as jnp
from jax import lax
from jax.experimental import pallas as pl
from jax.experimental.pallas import tpu as pltpu


def _round_up(x, m):
    return ((x + m - 1) // m) * m


# ----------------------------------------------------------------------------
# Fused kernel factory: FiLM -> dual FC -> dual (task-gated | regular) LSTM
# ----------------------------------------------------------------------------
def _make_kernel(offs, dims):
    T, B = dims['T'], dims['B']
    F, E, X = dims['F'], dims['E'], dims['X']
    H, H2 = dims['H'], dims['H2']
    G = 4 * H2                                   # fused gate width (= 128 at demo)

    def kernel(data_ref, state_ref, w_ref, out_ref, hc_ref):
        def w(name):
            r0, m, n = offs[name]                # static, 8-row-aligned offsets
            return w_ref[r0:r0 + m, :n]

        data = data_ref[...]                     # (N, F+E+X), one DMA
        obs = data[:, :F]
        task = data[:, F:F + E]
        ext = data[:, F + E:F + E + X]

        # --- FiLM: gamma/beta fused in one matmul (pre-broadcast over HW) -------
        gb = jnp.dot(task, w('w_gb'), preferred_element_type=jnp.float32) + w('b_gb')
        gamma, beta = gb[:, :F], gb[:, F:]
        mod = jax.nn.relu(obs * (1.0 + gamma) + beta) + obs     # film_residual=True

        # --- Dual FC: [mod | obs] (N,2F) @ block-diag (2F,2fc) -> [mod_fc|reg_fc]
        mo = jnp.concatenate([mod, obs], axis=1)
        fc_all = jax.nn.relu(
            jnp.dot(mo, w('w_fc'), preferred_element_type=jnp.float32) + w('b_fc'))

        # --- Hoisted (carry-independent) gate pre-activations for ALL timesteps -
        # Gate lane layout [i_m i_r | f_m f_r | g_m g_r | o_m o_r]; i/f/o columns
        # of wix / whh / bl are prescaled by 0.5 at pack time (sigmoid-via-tanh).
        xin = jnp.concatenate([ext, fc_all], axis=1)
        gates_x = jnp.dot(xin, w('wix'), preferred_element_type=jnp.float32) + w('bl')

        # --- Hoisted task gate: mod half = sigmoid(task@wt+bt), reg half = 1.0 --
        lane_h = lax.broadcasted_iota(jnp.int32, (1, H2), 1)
        tg_all = jax.nn.sigmoid(
            jnp.dot(task, w('wt'), preferred_element_type=jnp.float32) + w('bt'))
        tg_all = jnp.where(lane_h < H, tg_all, 1.0)

        # Post-tanh per-lane affine: g lanes keep tanh(x); i/f/o lanes 0.5*t+0.5.
        lane_g = lax.broadcasted_iota(jnp.int32, (1, G), 1)
        is_g = (lane_g >= 2 * H2) & (lane_g < 3 * H2)
        scale_v = jnp.where(is_g, 1.0, 0.5)
        off_v = jnp.where(is_g, 0.0, 0.5)

        whh = w('whh')
        gx = [gates_x[t * B:(t + 1) * B, :] for t in range(T)]
        tg = [tg_all[t * B:(t + 1) * B, :] for t in range(T)]

        h = state_ref[:, :H2]
        c = state_ref[:, H2:]
        hs = []
        # TODO(synk): for long T switch to lax.fori_loop with a partial unroll and
        # lane-dense VMEM scratch for gates_x / per-step outputs.
        for t in range(T):
            g = gx[t] + jnp.dot(h, whh, preferred_element_type=jnp.float32)
            ta = jnp.tanh(g)                     # single EUP pass over all 4 gates
            acts = ta * scale_v + off_v          # sigmoid(x) = 0.5*tanh(x/2) + 0.5
            i_g = acts[:, 0 * H2:1 * H2]
            f_g = acts[:, 1 * H2:2 * H2]
            g_g = acts[:, 2 * H2:3 * H2]
            o_g = acts[:, 3 * H2:4 * H2]
            c = f_g * c + tg[t] * (i_g * g_g)
            h = o_g * jnp.tanh(c)
            hs.append(h)

        out_ref[...] = jnp.concatenate(hs, axis=1)      # (B, T*2H), one lane-dense store
        hc_ref[...] = jnp.concatenate([h, c], axis=1)   # (B, 4H), written once

    return kernel


# ----------------------------------------------------------------------------
# Parameter packing (trace-time, tiny weight-only reshuffles)
# ----------------------------------------------------------------------------
def _interleave_gates(w_m, w_r, H):
    """(rows, 4H) x 2 -> (rows, 8H) laid out [i_m i_r | f_m f_r | g_m g_r | o_m o_r]."""
    rows = w_m.shape[0]
    return jnp.concatenate(
        [w_m.reshape(rows, 4, H), w_r.reshape(rows, 4, H)], axis=2).reshape(rows, 8 * H)


def _pack_weight_slab(entries):
    """Stack 2-D params into one lane-padded f32 slab with 8-row-aligned starts."""
    width = _round_up(max(a.shape[1] for _, a in entries), 128)
    chunks, offs, r = [], {}, 0
    for name, a in entries:
        a = jnp.asarray(a, jnp.float32)
        m, n = a.shape
        mp = _round_up(m, 8)
        chunks.append(jnp.zeros((mp, width), jnp.float32).at[:m, :n].set(a))
        offs[name] = (r, m, n)
        r += mp
    return jnp.concatenate(chunks, axis=0), offs


def _pack_fused_params(params, X, HW):
    """Repack per-branch params into the fused layouts and one weight slab."""
    H = params['mod_whh'].shape[0]
    H2 = 2 * H
    fc = params['film_wfc'].shape[1]
    C = params['film_wgb'].shape[1] // 2
    F = C * HW
    f32 = jnp.float32

    # FiLM gamma/beta weights fused and pre-broadcast over the HW positions.
    w_gb = jnp.concatenate(
        [jnp.repeat(params['film_wgb'][:, :C], HW, axis=1),
         jnp.repeat(params['film_wgb'][:, C:], HW, axis=1)], axis=1).astype(f32)
    b_gb = jnp.concatenate(
        [jnp.repeat(params['film_bgb'][:, :C], HW, axis=1),
         jnp.repeat(params['film_bgb'][:, C:], HW, axis=1)], axis=1).astype(f32)

    # Dual FC block-diagonal: [mod | obs] @ w_fc -> [mod_fc | reg_fc]
    z = jnp.zeros((F, fc), f32)
    w_fc = jnp.concatenate(
        [jnp.concatenate([params['film_wfc'], z], axis=1),
         jnp.concatenate([z, params['reg_wmlp']], axis=1)], axis=0)
    b_fc = jnp.concatenate([params['film_bfc'], params['reg_bmlp']], axis=1)

    # Dual LSTM: input rows follow the PyTorch concat order
    # lstm_input = cat(init_lstm_inputs + [fc_out]) -> extras rows first, fc rows last.
    wih_m, wih_r = params['mod_wih'], params['reg_wih']
    wie = _interleave_gates(wih_m[:X], wih_r[:X], H)             # extras feed both branches
    z4 = jnp.zeros((fc, 4 * H), f32)
    wif = jnp.concatenate([_interleave_gates(wih_m[X:], z4, H),  # mod fc -> mod columns
                           _interleave_gates(z4, wih_r[X:], H)], axis=0)
    wix = jnp.concatenate([wie, wif], axis=0)                    # (X + 2fc, 8H)
    zh = jnp.zeros((H, 4 * H), f32)
    whh = jnp.concatenate([_interleave_gates(params['mod_whh'], zh, H),
                           _interleave_gates(zh, params['reg_whh'], H)], axis=0)
    bl = _interleave_gates(params['mod_b'], params['reg_b'], H)

    # sigmoid(x) = 0.5*tanh(x/2) + 0.5 -> prescale ONLY the i/f/o gate columns by
    # 0.5; the g (cell-candidate) columns keep full scale.
    ifo_scale = jnp.concatenate([jnp.full((1, 2 * H2), 0.5, f32),      # i, f
                                 jnp.ones((1, H2), f32),               # g
                                 jnp.full((1, H2), 0.5, f32)], axis=1)  # o
    wix = wix * ifo_scale
    whh = whh * ifo_scale
    bl = bl * ifo_scale

    # Task gate: only the modulated half is real; reg half is forced to 1.0 in-kernel.
    wt = jnp.concatenate(
        [params['mod_wt'], jnp.zeros((params['mod_wt'].shape[0], H), f32)], axis=1)
    bt = jnp.concatenate([params['mod_bt'], jnp.zeros((1, H), f32)], axis=1)

    entries = [('w_gb', w_gb), ('b_gb', b_gb), ('w_fc', w_fc), ('b_fc', b_fc),
               ('wix', wix), ('bl', bl), ('whh', whh), ('wt', wt), ('bt', bt)]
    return _pack_weight_slab(entries)


# ----------------------------------------------------------------------------
# Parameter construction (deterministic, PyTorch-style uniform init)
# ----------------------------------------------------------------------------
def _uniform(key, shape, fan_in):
    k = 1.0 / jnp.sqrt(jnp.asarray(float(fan_in)))
    return jax.random.uniform(key, shape, jnp.float32, -k, k)


def init_params(key, *, action_dim, C, HW, E, fc, H_ind):
    flat = C * HW
    din = fc + action_dim + 1           # modulated_input_size + action_dim + 1
    keys = jax.random.split(key, 16)
    p = {}
    # FiLM modulation (modulated branch)
    p['film_wgb'] = _uniform(keys[0], (E, 2 * C), E)
    p['film_bgb'] = jnp.zeros((1, 2 * C), jnp.float32)
    p['film_wfc'] = _uniform(keys[1], (flat, fc), flat)
    p['film_bfc'] = _uniform(keys[2], (1, fc), flat)
    # Task-gated LSTM (modulated branch); gate order i, f, g, o (PyTorch)
    p['mod_wih'] = _uniform(keys[3], (din, 4 * H_ind), H_ind)
    p['mod_whh'] = _uniform(keys[4], (H_ind, 4 * H_ind), H_ind)
    p['mod_b'] = _uniform(keys[5], (1, 4 * H_ind), H_ind)
    p['mod_wt'] = _uniform(keys[6], (E, H_ind), E)
    p['mod_bt'] = jnp.zeros((1, H_ind), jnp.float32)
    # Regular branch: 'none' modulation -> MlpModel(flat, fc, ReLU)
    p['reg_wmlp'] = _uniform(keys[7], (flat, fc), flat)
    p['reg_bmlp'] = _uniform(keys[8], (1, fc), flat)
    # Regular LSTM
    p['reg_wih'] = _uniform(keys[9], (din, 4 * H_ind), H_ind)
    p['reg_whh'] = _uniform(keys[10], (H_ind, 4 * H_ind), H_ind)
    p['reg_b'] = _uniform(keys[11], (1, 4 * H_ind), H_ind)
    return p


# ----------------------------------------------------------------------------
# DualBodyModulatedMemory.forward
# ----------------------------------------------------------------------------
def dual_body_modulated_memory_forward(params, obs_emb, task_emb, init_lstm_inputs,
                                       init_rnn_state=None):
    """Returns (outm, (hm, cm), outr, (hr, cr)) like the PyTorch module with
    dual_body=True, task_modulation='film', lstm_type='task_gated'."""
    T, B = obs_emb.shape[:2]
    C = obs_emb.shape[2]
    HW = obs_emb.shape[3] * obs_emb.shape[4]
    F = C * HW
    N = T * B
    E = task_emb.shape[-1]
    H = params['mod_whh'].shape[0]
    H2 = 2 * H
    f32 = jnp.float32

    obs_flat = obs_emb.reshape(N, F).astype(f32)
    task_flat = task_emb.reshape(N, E).astype(f32)
    # TODO(synk): assumes init_lstm_inputs is the standard non-empty [action, reward] list.
    ext = jnp.concatenate(
        [e.reshape(N, -1).astype(f32) for e in init_lstm_inputs], axis=1)
    X = ext.shape[-1]

    # Single lane-packed activation slab -> one input DMA.
    data = jnp.concatenate([obs_flat, task_flat, ext], axis=1)

    if init_rnn_state is None:
        state = jnp.zeros((B, 2 * H2), f32)
    else:
        h0m, c0m, h0r, c0r = init_rnn_state
        state = jnp.concatenate(
            [h0m.reshape(B, H), h0r.reshape(B, H),
             c0m.reshape(B, H), c0r.reshape(B, H)], axis=1).astype(f32)

    slab, offs = _pack_fused_params(params, X, HW)
    kernel = _make_kernel(offs, dict(T=T, B=B, F=F, E=E, X=X, H=H, H2=H2))

    vmem = pl.BlockSpec(memory_space=pltpu.MemorySpace.VMEM)
    # TODO(synk): for production shapes add a batch grid axis ("parallel") so v7x's
    # second TensorCore is used, and T-chunk against its 64 MiB VMEM budget.
    out_dense, hc = pl.pallas_call(
        kernel,
        out_shape=(jax.ShapeDtypeStruct((B, T * H2), f32),
                   jax.ShapeDtypeStruct((B, 2 * H2), f32)),
        in_specs=[vmem, vmem, vmem],
        out_specs=(vmem, vmem),
    )(data, state, slab)

    out = out_dense.reshape(B, T, H2).swapaxes(0, 1)        # (T, B, 2H)
    outm, outr = out[..., :H], out[..., H:]
    hn, cn = hc[:, :H2], hc[:, H2:]
    hm, hr = hn[:, :H][None], hn[:, H:][None]               # (1, B, H) like nn.LSTM
    cm, cr = cn[:, :H][None], cn[:, H:][None]
    return outm, (hm, cm), outr, (hr, cr)


# ----------------------------------------------------------------------------
# Pure-JAX reference (same module semantics / approximations) for a check in main
# ----------------------------------------------------------------------------
def _reference_forward(params, obs_emb, task_emb, init_lstm_inputs, init_rnn_state=None):
    T, B = obs_emb.shape[:2]
    C = obs_emb.shape[2]
    HW = obs_emb.shape[3] * obs_emb.shape[4]
    F = C * HW
    N = T * B
    E = task_emb.shape[-1]
    H = params['mod_whh'].shape[0]
    f32 = jnp.float32

    obs = obs_emb.reshape(N, F).astype(f32)
    task = task_emb.reshape(N, E).astype(f32)
    gamma = jnp.repeat(task @ params['film_wgb'][:, :C] + params['film_bgb'][:, :C], HW, axis=1)
    beta = jnp.repeat(task @ params['film_wgb'][:, C:] + params['film_bgb'][:, C:], HW, axis=1)
    mod = jax.nn.relu(obs * (1.0 + gamma) + beta) + obs
    fc_m = jax.nn.relu(mod @ params['film_wfc'] + params['film_bfc'])
    fc_r = jax.nn.relu(obs @ params['reg_wmlp'] + params['reg_bmlp'])

    ext = jnp.concatenate(
        [e.reshape(T, B, -1).astype(f32) for e in init_lstm_inputs], axis=2)
    xm = jnp.concatenate([ext, fc_m.reshape(T, B, -1)], axis=2)
    xr = jnp.concatenate([ext, fc_r.reshape(T, B, -1)], axis=2)
    task_seq = task_emb.reshape(T, B, E).astype(f32)

    if init_rnn_state is None:
        hm = jnp.zeros((B, H), f32); cm = jnp.zeros((B, H), f32)
        hr = jnp.zeros((B, H), f32); cr = jnp.zeros((B, H), f32)
    else:
        h0m, c0m, h0r, c0r = init_rnn_state
        hm, cm = h0m.reshape(B, H), c0m.reshape(B, H)
        hr, cr = h0r.reshape(B, H), c0r.reshape(B, H)

    def gates(x, h, wih, whh, b):
        g = x @ wih + h @ whh + b
        return (jax.nn.sigmoid(g[:, 0 * H:1 * H]), jax.nn.sigmoid(g[:, 1 * H:2 * H]),
                jnp.tanh(g[:, 2 * H:3 * H]), jax.nn.sigmoid(g[:, 3 * H:4 * H]))

    outm, outr = [], []
    for t in range(T):
        i, f, g, o = gates(xm[t], hm, params['mod_wih'], params['mod_whh'], params['mod_b'])
        tg = jax.nn.sigmoid(task_seq[t] @ params['mod_wt'] + params['mod_bt'])
        cm = f * cm + tg * (i * g)
        hm = o * jnp.tanh(cm)
        outm.append(hm)
        i, f, g, o = gates(xr[t], hr, params['reg_wih'], params['reg_whh'], params['reg_b'])
        cr = f * cr + i * g
        hr = o * jnp.tanh(cr)
        outr.append(hr)
    return (jnp.stack(outm), (hm[None], cm[None]),
            jnp.stack(outr), (hr[None], cr[None]))


# ----------------------------------------------------------------------------
if __name__ == "__main__":
    key = jax.random.PRNGKey(0)
    T, B = 4, 2
    C, Himg, Wimg = 4, 4, 4          # conv_feature_dims
    E = 32                           # text_embed_size
    fc = 32                          # fc_size
    action_dim = 5
    lstm_size = 32
    H_ind = lstm_size // 2           # dual_body -> individual_size = 16

    k_param, k_obs, k_task, k_act, k_rew = jax.random.split(key, 5)
    params = init_params(k_param, action_dim=action_dim, C=C, HW=Himg * Wimg,
                         E=E, fc=fc, H_ind=H_ind)

    obs_emb = jax.random.normal(k_obs, (T, B, C, Himg, Wimg), jnp.float32)
    task_emb = jax.random.normal(k_task, (T, B, E), jnp.float32)
    prev_action = jax.nn.one_hot(
        jax.random.randint(k_act, (T, B), 0, action_dim), action_dim, dtype=jnp.float32)
    prev_reward = jax.random.normal(k_rew, (T, B, 1), jnp.float32)

    outm, (hm, cm), outr, (hr, cr) = dual_body_modulated_memory_forward(
        params, obs_emb, task_emb, init_lstm_inputs=[prev_action, prev_reward])
    jax.block_until_ready((outm, hm, cm, outr, hr, cr))

    assert outm.shape == (T, B, H_ind) and outr.shape == (T, B, H_ind)
    assert hm.shape == (1, B, H_ind) and cr.shape == (1, B, H_ind)

    # Correctness check vs the pure-JAX reference (catches any packing/layout bug;
    # the only numeric deltas are matmul fusion + the exact sigmoid-via-tanh identity).
    r_outm, (r_hm, r_cm), r_outr, (r_hr, r_cr) = _reference_forward(
        params, obs_emb, task_emb, [prev_action, prev_reward])
    for got, want in [(outm, r_outm), (outr, r_outr), (hm, r_hm), (cm, r_cm),
                      (hr, r_hr), (cr, r_cr)]:
        err = float(jnp.max(jnp.abs(got - want)))
        assert err < 1e-3, f"mismatch vs reference: max abs err = {err}"

    print("KERNEL_OK")
</pallas_src>

<mosaic_0001>
module attributes {stable_mosaic.version = 11 : i64} {
  func.func @kernel(%arg0: memref<8x102xf32, #tpu.memory_space<vmem>>, %arg1: memref<2x64xf32, #tpu.memory_space<vmem>>, %arg2: memref<328x128xf32, #tpu.memory_space<vmem>>, %arg3: memref<2x128xf32, #tpu.memory_space<vmem>>, %arg4: memref<2x64xf32, #tpu.memory_space<vmem>>) attributes {dimension_semantics = [], scalar_prefetch = 0 : i64, scratch_operands = 0 : i64, tpu.core_type = #tpu.core_type<tc>} {
    %c0 = arith.constant 0 : index
    %c0_0 = arith.constant 0 : index
    %0 = vector.load %arg0[%c0, %c0_0] : memref<8x102xf32, #tpu.memory_space<vmem>>, vector<8x102xf32>
    %1 = vector.extract_strided_slice %0 {offsets = [0, 0], sizes = [8, 64], strides = [1, 1]} : vector<8x102xf32> to vector<8x64xf32>
    %2 = vector.extract_strided_slice %0 {offsets = [0, 64], sizes = [8, 32], strides = [1, 1]} : vector<8x102xf32> to vector<8x32xf32>
    %3 = vector.extract_strided_slice %0 {offsets = [0, 96], sizes = [8, 6], strides = [1, 1]} : vector<8x102xf32> to vector<8x6xf32>
    %c0_1 = arith.constant 0 : index
    %c0_2 = arith.constant 0 : index
    %4 = vector.load %arg2[%c0_1, %c0_2] : memref<328x128xf32, #tpu.memory_space<vmem>>, vector<32x128xf32>
    %cst = arith.constant dense<0.000000e+00> : vector<8x128xf32>
    %5 = tpu.matmul %2, %4, %cst {dimension_numbers = #tpu.dot_dimension_numbers<[1], [0], [0], [1], [0, 0, 1, 1], [], []>} : vector<8x32xf32>, vector<32x128xf32>, vector<8x128xf32> -> vector<8x128xf32>
    %c32 = arith.constant 32 : index
    %c0_3 = arith.constant 0 : index
    %6 = vector.load %arg2[%c32, %c0_3] : memref<328x128xf32, #tpu.memory_space<vmem>>, vector<1x128xf32>
    %7 = vector.broadcast %6 : vector<1x128xf32> to vector<8x128xf32>
    %8 = arith.addf %5, %7 : vector<8x128xf32>
    %9 = vector.extract_strided_slice %8 {offsets = [0, 0], sizes = [8, 64], strides = [1, 1]} : vector<8x128xf32> to vector<8x64xf32>
    %10 = vector.extract_strided_slice %8 {offsets = [0, 64], sizes = [8, 64], strides = [1, 1]} : vector<8x128xf32> to vector<8x64xf32>
    %cst_4 = arith.constant 1.000000e+00 : f32
    %11 = vector.broadcast %cst_4 : f32 to vector<8x64xf32>
    %12 = arith.addf %11, %9 : vector<8x64xf32>
    %13 = arith.mulf %1, %12 : vector<8x64xf32>
    %14 = arith.addf %13, %10 : vector<8x64xf32>
    %cst_5 = arith.constant 0.000000e+00 : f32
    %15 = vector.broadcast %cst_5 : f32 to vector<8x64xf32>
    %16 = arith.maximumf %14, %15 : vector<8x64xf32>
    %17 = arith.addf %16, %1 : vector<8x64xf32>
    %18 = tpu.concatenate %17, %1 in 1 : vector<8x64xf32>, vector<8x64xf32> -> vector<8x128xf32>
    %c40 = arith.constant 40 : index
    %c0_6 = arith.constant 0 : index
    %19 = vector.load %arg2[%c40, %c0_6] : memref<328x128xf32, #tpu.memory_space<vmem>>, vector<128x64xf32>
    %cst_7 = arith.constant dense<0.000000e+00> : vector<8x64xf32>
    %20 = tpu.matmul %18, %19, %cst_7 {dimension_numbers = #tpu.dot_dimension_numbers<[1], [0], [0], [1], [0, 0, 1, 1], [], []>} : vector<8x128xf32>, vector<128x64xf32>, vector<8x64xf32> -> vector<8x64xf32>
    %c168 = arith.constant 168 : index
    %c0_8 = arith.constant 0 : index
    %21 = vector.load %arg2[%c168, %c0_8] : memref<328x128xf32, #tpu.memory_space<vmem>>, vector<1x64xf32>
    %22 = vector.broadcast %21 : vector<1x64xf32> to vector<8x64xf32>
    %23 = arith.addf %20, %22 : vector<8x64xf32>
    %cst_9 = arith.constant 0.000000e+00 : f32
    %24 = vector.broadcast %cst_9 : f32 to vector<8x64xf32>
    %25 = arith.maximumf %23, %24 : vector<8x64xf32>
    %26 = tpu.concatenate %3, %25 in 1 : vector<8x6xf32>, vector<8x64xf32> -> vector<8x70xf32>
    %c176 = arith.constant 176 : index
    %c0_10 = arith.constant 0 : index
    %27 = vector.load %arg2[%c176, %c0_10] : memref<328x128xf32, #tpu.memory_space<vmem>>, vector<70x128xf32>
    %cst_11 = arith.constant dense<0.000000e+00> : vector<8x128xf32>
    %28 = tpu.matmul %26, %27, %cst_11 {dimension_numbers = #tpu.dot_dimension_numbers<[1], [0], [0], [1], [0, 0, 1, 1], [], []>} : vector<8x70xf32>, vector<70x128xf32>, vector<8x128xf32> -> vector<8x128xf32>
    %c248 = arith.constant 248 : index
    %c0_12 = arith.constant 0 : index
    %29 = vector.load %arg2[%c248, %c0_12] : memref<328x128xf32, #tpu.memory_space<vmem>>, vector<1x128xf32>
    %30 = vector.broadcast %29 : vector<1x128xf32> to vector<8x128xf32>
    %31 = arith.addf %28, %30 : vector<8x128xf32>
    %32 = tpu.iota {dimensions = array<i32: 1>} : vector<1x32xi32>
    %c288 = arith.constant 288 : index
    %c0_13 = arith.constant 0 : index
    %33 = vector.load %arg2[%c288, %c0_13] : memref<328x128xf32, #tpu.memory_space<vmem>>, vector<32x32xf32>
    %cst_14 = arith.constant dense<0.000000e+00> : vector<8x32xf32>
    %34 = tpu.matmul %2, %33, %cst_14 {dimension_numbers = #tpu.dot_dimension_numbers<[1], [0], [0], [1], [0, 0, 1, 1], [], []>} : vector<8x32xf32>, vector<32x32xf32>, vector<8x32xf32> -> vector<8x32xf32>
    %c320 = arith.constant 320 : index
    %c0_15 = arith.constant 0 : index
    %35 = vector.load %arg2[%c320, %c0_15] : memref<328x128xf32, #tpu.memory_space<vmem>>, vector<1x32xf32>
    %36 = vector.broadcast %35 : vector<1x32xf32> to vector<8x32xf32>
    %37 = arith.addf %34, %36 : vector<8x32xf32>
    %38 = arith.negf %37 : vector<8x32xf32>
    %39 = math.exp %38 : vector<8x32xf32>
    %cst_16 = arith.constant 1.000000e+00 : f32
    %40 = vector.broadcast %cst_16 : f32 to vector<8x32xf32>
    %41 = arith.addf %40, %39 : vector<8x32xf32>
    %42 = arith.divf %40, %41 : vector<8x32xf32>
    %c16_i32 = arith.constant 16 : i32
    %43 = vector.broadcast %c16_i32 : i32 to vector<1x32xi32>
    %44 = arith.cmpi slt, %32, %43 : vector<1x32xi32>
    %cst_17 = arith.constant 1.000000e+00 : f32
    %45 = vector.shape_cast %44 : vector<1x32xi1> to vector<1x32xi1>
    %46 = vector.broadcast %45 : vector<1x32xi1> to vector<8x32xi1>
    %47 = vector.broadcast %cst_17 : f32 to vector<8x32xf32>
    %48 = arith.select %46, %42, %47 : vector<8x32xi1>, vector<8x32xf32>
    %49 = tpu.iota {dimensions = array<i32: 1>} : vector<1x128xi32>
    %c64_i32 = arith.constant 64 : i32
    %50 = vector.broadcast %c64_i32 : i32 to vector<1x128xi32>
    %51 = arith.cmpi sge, %49, %50 : vector<1x128xi32>
    %c96_i32 = arith.constant 96 : i32
    %52 = vector.broadcast %c96_i32 : i32 to vector<1x128xi32>
    %53 = arith.cmpi slt, %49, %52 : vector<1x128xi32>
    %54 = arith.andi %51, %53 : vector<1x128xi1>
    %cst_18 = arith.constant 1.000000e+00 : f32
    %cst_19 = arith.constant 5.000000e-01 : f32
    %55 = vector.broadcast %cst_18 : f32 to vector<1x128xf32>
    %56 = vector.broadcast %cst_19 : f32 to vector<1x128xf32>
    %57 = arith.select %54, %55, %56 : vector<1x128xi1>, vector<1x128xf32>
    %cst_20 = arith.constant 0.000000e+00 : f32
    %cst_21 = arith.constant 5.000000e-01 : f32
    %58 = vector.broadcast %cst_20 : f32 to vector<1x128xf32>
    %59 = vector.broadcast %cst_21 : f32 to vector<1x128xf32>
    %60 = arith.select %54, %58, %59 : vector<1x128xi1>, vector<1x128xf32>
    %c256 = arith.constant 256 : index
    %c0_22 = arith.constant 0 : index
    %61 = vector.load %arg2[%c256, %c0_22] : memref<328x128xf32, #tpu.memory_space<vmem>>, vector<32x128xf32>
    %62 = vector.extract_strided_slice %31 {offsets = [0, 0], sizes = [2, 128], strides = [1, 1]} : vector<8x128xf32> to vector<2x128xf32>
    %63 = vector.extract_strided_slice %31 {offsets = [2, 0], sizes = [2, 128], strides = [1, 1]} : vector<8x128xf32> to vector<2x128xf32>
    %64 = vector.extract_strided_slice %31 {offsets = [4, 0], sizes = [2, 128], strides = [1, 1]} : vector<8x128xf32> to vector<2x128xf32>
    %65 = vector.extract_strided_slice %31 {offsets = [6, 0], sizes = [2, 128], strides = [1, 1]} : vector<8x128xf32> to vector<2x128xf32>
    %66 = vector.extract_strided_slice %48 {offsets = [0, 0], sizes = [2, 32], strides = [1, 1]} : vector<8x32xf32> to vector<2x32xf32>
    %67 = vector.extract_strided_slice %48 {offsets = [2, 0], sizes = [2, 32], strides = [1, 1]} : vector<8x32xf32> to vector<2x32xf32>
    %68 = vector.extract_strided_slice %48 {offsets = [4, 0], sizes = [2, 32], strides = [1, 1]} : vector<8x32xf32> to vector<2x32xf32>
    %69 = vector.extract_strided_slice %48 {offsets = [6, 0], sizes = [2, 32], strides = [1, 1]} : vector<8x32xf32> to vector<2x32xf32>
    %c0_23 = arith.constant 0 : index
    %c0_24 = arith.constant 0 : index
    %70 = vector.load %arg1[%c0_23, %c0_24] : memref<2x64xf32, #tpu.memory_space<vmem>>, vector<2x32xf32>
    %c0_25 = arith.constant 0 : index
    %c32_26 = arith.constant 32 : index
    %71 = vector.load %arg1[%c0_25, %c32_26] : memref<2x64xf32, #tpu.memory_space<vmem>>, vector<2x32xf32>
    %cst_27 = arith.constant dense<0.000000e+00> : vector<2x128xf32>
    %72 = tpu.matmul %70, %61, %cst_27 {dimension_numbers = #tpu.dot_dimension_numbers<[1], [0], [0], [1], [0, 0, 1, 1], [], []>} : vector<2x32xf32>, vector<32x128xf32>, vector<2x128xf32> -> vector<2x128xf32>
    %73 = arith.addf %62, %72 : vector<2x128xf32>
    %74 = math.tanh %73 : vector<2x128xf32>
    %75 = vector.broadcast %57 : vector<1x128xf32> to vector<2x128xf32>
    %76 = arith.mulf %74, %75 : vector<2x128xf32>
    %77 = vector.broadcast %60 : vector<1x128xf32> to vector<2x128xf32>
    %78 = arith.addf %76, %77 : vector<2x128xf32>
    %79 = vector.extract_strided_slice %78 {offsets = [0, 0], sizes = [2, 32], strides = [1, 1]} : vector<2x128xf32> to vector<2x32xf32>
    %80 = vector.extract_strided_slice %78 {offsets = [0, 32], sizes = [2, 32], strides = [1, 1]} : vector<2x128xf32> to vector<2x32xf32>
    %81 = vector.extract_strided_slice %78 {offsets = [0, 64], sizes = [2, 32], strides = [1, 1]} : vector<2x128xf32> to vector<2x32xf32>
    %82 = vector.extract_strided_slice %78 {offsets = [0, 96], sizes = [2, 32], strides = [1, 1]} : vector<2x128xf32> to vector<2x32xf32>
    %83 = arith.mulf %80, %71 : vector<2x32xf32>
    %84 = arith.mulf %79, %81 : vector<2x32xf32>
    %85 = arith.mulf %66, %84 : vector<2x32xf32>
    %86 = arith.addf %83, %85 : vector<2x32xf32>
    %87 = math.tanh %86 : vector<2x32xf32>
    %88 = arith.mulf %82, %87 : vector<2x32xf32>
    %cst_28 = arith.constant dense<0.000000e+00> : vector<2x128xf32>
    %89 = tpu.matmul %88, %61, %cst_28 {dimension_numbers = #tpu.dot_dimension_numbers<[1], [0], [0], [1], [0, 0, 1, 1], [], []>} : vector<2x32xf32>, vector<32x128xf32>, vector<2x128xf32> -> vector<2x128xf32>
    %90 = arith.addf %63, %89 : vector<2x128xf32>
    %91 = math.tanh %90 : vector<2x128xf32>
    %92 = vector.broadcast %57 : vector<1x128xf32> to vector<2x128xf32>
    %93 = arith.mulf %91, %92 : vector<2x128xf32>
    %94 = vector.broadcast %60 : vector<1x128xf32> to vector<2x128xf32>
    %95 = arith.addf %93, %94 : vector<2x128xf32>
    %96 = vector.extract_strided_slice %95 {offsets = [0, 0], sizes = [2, 32], strides = [1, 1]} : vector<2x128xf32> to vector<2x32xf32>
    %97 = vector.extract_strided_slice %95 {offsets = [0, 32], sizes = [2, 32], strides = [1, 1]} : vector<2x128xf32> to vector<2x32xf32>
    %98 = vector.extract_strided_slice %95 {offsets = [0, 64], sizes = [2, 32], strides = [1, 1]} : vector<2x128xf32> to vector<2x32xf32>
    %99 = vector.extract_strided_slice %95 {offsets = [0, 96], sizes = [2, 32], strides = [1, 1]} : vector<2x128xf32> to vector<2x32xf32>
    %100 = arith.mulf %97, %86 : vector<2x32xf32>
    %101 = arith.mulf %96, %98 : vector<2x32xf32>
    %102 = arith.mulf %67, %101 : vector<2x32xf32>
    %103 = arith.addf %100, %102 : vector<2x32xf32>
    %104 = math.tanh %103 : vector<2x32xf32>
    %105 = arith.mulf %99, %104 : vector<2x32xf32>
    %cst_29 = arith.constant dense<0.000000e+00> : vector<2x128xf32>
    %106 = tpu.matmul %105, %61, %cst_29 {dimension_numbers = #tpu.dot_dimension_numbers<[1], [0], [0], [1], [0, 0, 1, 1], [], []>} : vector<2x32xf32>, vector<32x128xf32>, vector<2x128xf32> -> vector<2x128xf32>
    %107 = arith.addf %64, %106 : vector<2x128xf32>
    %108 = math.tanh %107 : vector<2x128xf32>
    %109 = vector.broadcast %57 : vector<1x128xf32> to vector<2x128xf32>
    %110 = arith.mulf %108, %109 : vector<2x128xf32>
    %111 = vector.broadcast %60 : vector<1x128xf32> to vector<2x128xf32>
    %112 = arith.addf %110, %111 : vector<2x128xf32>
    %113 = vector.extract_strided_slice %112 {offsets = [0, 0], sizes = [2, 32], strides = [1, 1]} : vector<2x128xf32> to vector<2x32xf32>
    %114 = vector.extract_strided_slice %112 {offsets = [0, 32], sizes = [2, 32], strides = [1, 1]} : vector<2x128xf32> to vector<2x32xf32>
    %115 = vector.extract_strided_slice %112 {offsets = [0, 64], sizes = [2, 32], strides = [1, 1]} : vector<2x128xf32> to vector<2x32xf32>
    %116 = vector.extract_strided_slice %112 {offsets = [0, 96], sizes = [2, 32], strides = [1, 1]} : vector<2x128xf32> to vector<2x32xf32>
    %117 = arith.mulf %114, %103 : vector<2x32xf32>
    %118 = arith.mulf %113, %115 : vector<2x32xf32>
    %119 = arith.mulf %68, %118 : vector<2x32xf32>
    %120 = arith.addf %117, %119 : vector<2x32xf32>
    %121 = math.tanh %120 : vector<2x32xf32>
    %122 = arith.mulf %116, %121 : vector<2x32xf32>
    %cst_30 = arith.constant dense<0.000000e+00> : vector<2x128xf32>
    %123 = tpu.matmul %122, %61, %cst_30 {dimension_numbers = #tpu.dot_dimension_numbers<[1], [0], [0], [1], [0, 0, 1, 1], [], []>} : vector<2x32xf32>, vector<32x128xf32>, vector<2x128xf32> -> vector<2x128xf32>
    %124 = arith.addf %65, %123 : vector<2x128xf32>
    %125 = math.tanh %124 : vector<2x128xf32>
    %126 = vector.broadcast %57 : vector<1x128xf32> to vector<2x128xf32>
    %127 = arith.mulf %125, %126 : vector<2x128xf32>
    %128 = vector.broadcast %60 : vector<1x128xf32> to vector<2x128xf32>
    %129 = arith.addf %127, %128 : vector<2x128xf32>
    %130 = vector.extract_strided_slice %129 {offsets = [0, 0], sizes = [2, 32], strides = [1, 1]} : vector<2x128xf32> to vector<2x32xf32>
    %131 = vector.extract_strided_slice %129 {offsets = [0, 32], sizes = [2, 32], strides = [1, 1]} : vector<2x128xf32> to vector<2x32xf32>
    %132 = vector.extract_strided_slice %129 {offsets = [0, 64], sizes = [2, 32], strides = [1, 1]} : vector<2x128xf32> to vector<2x32xf32>
    %133 = vector.extract_strided_slice %129 {offsets = [0, 96], sizes = [2, 32], strides = [1, 1]} : vector<2x128xf32> to vector<2x32xf32>
    %134 = arith.mulf %131, %120 : vector<2x32xf32>
    %135 = arith.mulf %130, %132 : vector<2x32xf32>
    %136 = arith.mulf %69, %135 : vector<2x32xf32>
    %137 = arith.addf %134, %136 : vector<2x32xf32>
    %138 = math.tanh %137 : vector<2x32xf32>
    %139 = arith.mulf %133, %138 : vector<2x32xf32>
    %140 = tpu.concatenate %88, %105, %122, %139 in 1 : vector<2x32xf32>, vector<2x32xf32>, vector<2x32xf32>, vector<2x32xf32> -> vector<2x128xf32>
    %c0_31 = arith.constant 0 : index
    %c0_32 = arith.constant 0 : index
    %141 = vector.load %arg3[%c0_31, %c0_32] : memref<2x128xf32, #tpu.memory_space<vmem>>, vector<2x128xf32>
    tpu.vector_store %arg3[%c0_31, %c0_32], %140 {strides = array<i32>} : memref<2x128xf32, #tpu.memory_space<vmem>>, vector<2x128xf32>,
    %142 = tpu.concatenate %139, %137 in 1 : vector<2x32xf32>, vector<2x32xf32> -> vector<2x64xf32>
    %c0_33 = arith.constant 0 : index
    %c0_34 = arith.constant 0 : index
    %143 = vector.load %arg4[%c0_33, %c0_34] : memref<2x64xf32, #tpu.memory_space<vmem>>, vector<2x64xf32>
    tpu.vector_store %arg4[%c0_33, %c0_34], %142 {strides = array<i32>} : memref<2x64xf32, #tpu.memory_space<vmem>>, vector<2x64xf32>,
    return
  }
}

</mosaic_0001>

<bundles_post_ra>
// kernel: tpu_custom_call.1
= control target key start
LH: loop header
LB: loop body
LE: loop exit
PB: predicated region body
PF: predicated region fallthrough
CT: control target
= control target key end

     0   :  { %10 = vsyncpa [#allocation3], 0  ;;  %s1510_s0 = inlined_call_operand.hbm [shape: f32[8,102], index: 0, kind: input, shape index: {}]   ;;  %s1511_s1 = inlined_call_operand.vmem [shape: f32[2,64], index: 1, kind: input, shape index: {}]   ;;  %s1512_s2 = inlined_call_operand.hbm [shape: f32[328,128], index: 2, kind: input, shape index: {}]   ;;  %s1513_s3 = inlined_call_operand.hbm [shape: f32[2,128], index: 3, kind: output, shape index: {0}]   ;;  %s1514_s4 = inlined_call_operand.hbm [shape: f32[2,64], index: 4, kind: output, shape index: {1}]  }
   0x1   :  { %11 = vsyncpa [#allocation6], 0 }
   0x2   :  { %12 = vsyncpa [#allocation4], 0 }
   0x3   :  { %13 = vsyncpa [#allocation9], 0  ;;  %s1287_s15 = smov [#allocation2]   ;;  %s1288_s17 = smov [#allocation5]  }
   0x4   :  { %s20_s16 = sshll.u32 %s1287_s15, 4  ;;  %s31_s18 = sshll.u32 %s1288_s17, 4  ;;  %s21_s16 = int_to_ptr.vmem [resolvable:$true] %s20_s16  ;;  %s1326_s18 = int_to_ptr.vmem [resolvable:$true] %s31_s18 }
   0x5   :  { %s1191_s21 = scalar_lea.hbm %s1510_s0, 128 }
   0x6   :  { %p1192_p0 = scmp.ne.s32.totalorder %s1510_s0, %s1191_s21  ;;  %p1195_p1 = scmp.lt.u32.totalorder %s1191_s21, %s1510_s0 }
   0x8   :  { %p1197_p2 = pnand %p1195_p1, %p1192_p0 }
   0xa   :  { %1200 = shalt.err (!%p1197_p2)
}
   0xb   :  { %s1201_s26 = scalar_lea.vmem %s21_s16, 128  ;;  %p1206_p4 = scmp.lt.s32.totalorder %s21_s16, %s21_s16 }
   0xc   :  { %p1202_p3 = scmp.ne.s32.totalorder %s21_s16, %s1201_s26  ;;  %p1207_p5 = scmp.lt.s32.totalorder %s1201_s26, %s1201_s26 }
   0xe   :  { %p1208_p6 = por %p1207_p5, %p1206_p4 }
  0x10   :  { %p1209_p7 = pnand %p1208_p6, %p1202_p3 }
  0x12   :  { %1212 = shalt.err (!%p1209_p7)
}
  0x13   :  { %23 = dma.hbm_to_vmem [thread:$0]  %s1510_s0, 128, %s21_s16, [#allocation3]  }
  0x14   :  { %s1213_s5 = scalar_lea.hbm %s1512_s2, 5248 }
  0x15   :  { %p1214_p8 = scmp.ne.s32.totalorder %s1512_s2, %s1213_s5  ;;  %p1217_p9 = scmp.lt.u32.totalorder %s1213_s5, %s1512_s2 }
  0x17   :  { %p1219_p10 = pnand %p1217_p9, %p1214_p8 }
  0x19   :  { %1222 = shalt.err (!%p1219_p10)
}
  0x1a   :  { %s1223_s10 = scalar_lea.vmem %s1326_s18, 5248  ;;  %p1228_p12 = scmp.lt.s32.totalorder %s1326_s18, %s1326_s18 }
  0x1b   :  { %p1224_p11 = scmp.ne.s32.totalorder %s1326_s18, %s1223_s10  ;;  %p1229_p13 = scmp.lt.s32.totalorder %s1223_s10, %s1223_s10 }
  0x1d   :  { %p1230_p0 = por %p1229_p13, %p1228_p12 }
  0x1f   :  { %p1231_p1 = pnand %p1230_p0, %p1224_p11 }
  0x21   :  { %1234 = shalt.err (!%p1231_p1)
}
  0x22   :  { %s1289_s0 = smov 128   ;;  %s1290_s11 = smov 8  }
  0x23   :  { %37 = dma.hbm_to_vmem [thread:$0]  %s1512_s2, 5248, %s1326_s18, [#allocation6], %s1289_s0, %s1289_s0, %s1290_s11  }
  0x24   :  { %1279 = dma.done.wait [#allocation3], 128  }
  0x25   :  { %1280 = vsyncadd [#allocation3], 4294967168 }
  0x26   :  { %1281 = dma.done.wait [#allocation6], 5248  }
  0x27   :  { %1282 = vsyncadd [#allocation6], 4294962048  ;;  %v1291_v0 = vmov 0.0|0.0   ;;  %vm1292_vm0 = vmmov 0   ;;  %v1293_v1 = vmov 0.0   ;;  %v1363_v2 = vld [vmem:[#allocation2] sm:$0xff] }
  0x28   :  { %1085 = vmatprep.subr.bf16.mxu0 %v1291_v0  ;;  %971 = vmatprep.mubr.msk.f32.mxu0 %vm1292_vm0, %v1293_v1  ;;  %v45_v3 = vld [vmem:[#allocation5] sm:$0xff]  ;;  %v46_v4 = vld [vmem:[#allocation5 + $0x8] sm:$0xff]  ;;  %s1294_s2 = smov 64   ;;  %v47_v6 = vld [vmem:[#allocation5 + $0x10] sm:$0xff]  ;;  %vm57_vm1 = vcmask 261120   ;;  %vm140_vm2 = vcmask 523264  }
  0x29   :  { %1091 = vmatprep.subr.bf16.mxu1 %v1291_v0  ;;  %1006 = vmatprep.mubr.msk.f32.mxu1 %vm1292_vm0, %v1293_v1  ;;  %v1086_v5 = vpack.c.bf16 %v46_v4, %v45_v3  ;;  %v48_v7 = vld [vmem:[#allocation5 + $0x18] sm:$0xff]  ;;  %v142_v10 = vld [vmem:[#allocation5 + $0x28] sm:$0xff]  ;;  %v143_v11 = vld [vmem:[#allocation5 + $0x30] sm:$0xff]  ;;  %s1295_s14 = smov 32   ;;  %vm261_vm3 = vcmask 1045504   ;;  %s1296_s17 = smov 6  }
  0x2a   :  { %55 = vrot.lane.b32.xlu0 %v1363_v2, %s1294_s2  ;;  %v1089_v8 = vpack.c.bf16 %v48_v7, %v47_v6  ;;  %v144_v12 = vld [vmem:[#allocation5 + $0x38] sm:$0xff]  ;;  %v1092_v13 = vpack.c.bf16 %v143_v11, %v142_v10  ;;  %v145_v14 = vld [vmem:[#allocation5 + $0x40] sm:$0xff]  ;;  %v146_v16 = vld [vmem:[#allocation5 + $0x48] sm:$0xff]  ;;  %234 = vrot.lane.b32.xlu1 %v1363_v2, %s1295_s14  ;;  %vm241_vm4 = vcmask 48128   ;;  %vm257_vm5 = vcmask 572416   ;;  %s1299_s18 = smov [#allocation7]  }
  0x2b   :  { %1087 = vmatpush3.bf16.msra.mxu0 %v1086_v5  ;;  %v1095_v15 = vpack.c.bf16 %v145_v14, %v144_v12  ;;  %v147_v17 = vld [vmem:[#allocation5 + $0x50] sm:$0xff]  ;;  %v148_v19 = vld [vmem:[#allocation5 + $0x58] sm:$0xff]  ;;  %v149_v20 = vld [vmem:[#allocation5 + $0x60] sm:$0xff]  ;;  %s869_s19 = sshll.u32 %s1299_s18, 4  ;;  %vm854_vm10 = vcmask 785408   ;;  %s870_s19 = int_to_ptr.vmem [resolvable:$true] %s869_s19 }
  0x2c   :  { %1088 = vmatprep.subr.bf16.mxu0 %v1291_v0  ;;  %1093 = vmatpush3.bf16.msra.mxu1 %v1092_v13  ;;  %v1098_v18 = vpack.c.bf16 %v147_v17, %v146_v16  ;;  %v1101_v21 = vpack.c.bf16 %v149_v20, %v148_v19  ;;  %v150_v22 = vld [vmem:[#allocation5 + $0x68] sm:$0xff]  ;;  %v151_v23 = vld [vmem:[#allocation5 + $0x70] sm:$0xff]  ;;  %v152_v25 = vld [vmem:[#allocation5 + $0x78] sm:$0xff]  ;;  %s1235_s20 = scalar_lea.vmem %s870_s19, 32  ;;  %p1240_p3 = scmp.lt.s32.totalorder %s870_s19, %s870_s19 }
  0x2d   :  { %1094 = vmatprep.subr.bf16.mxu1 %v1291_v0  ;;  %v1104_v24 = vpack.c.bf16 %v151_v23, %v150_v22  ;;  %v153_v26 = vld [vmem:[#allocation5 + $0x80] sm:$0xff]  ;;  %v154_v28 = vld [vmem:[#allocation5 + $0x88] sm:$0xff]  ;;  %v155_v29 = vld [vmem:[#allocation5 + $0x90] sm:$0xff]  ;;  %p1236_p2 = scmp.ne.s32.totalorder %s870_s19, %s1235_s20  ;;  %p1241_p4 = scmp.lt.s32.totalorder %s1235_s20, %s1235_s20 }
  0x2e   :  { %v1107_v27 = vpack.c.bf16 %v153_v26, %v152_v25  ;;  %v1110_v30 = vpack.c.bf16 %v155_v29, %v154_v28  ;;  %v156_v31 = vld [vmem:[#allocation5 + $0x98] sm:$0xff]  ;;  %v157_v32 = vld [vmem:[#allocation5 + $0xa0] sm:$0xff]  ;;  %v243_v45 = vld [vmem:[#allocation5 + $0xb0] sm:$0xff] }
  0x2f   :  { %1090 = vmatpush3.bf16.msra.mxu0 %v1089_v8  ;;  %v1113_v33 = vpack.c.bf16 %v157_v32, %v156_v31  ;;  %v893_v34 = vld [vmem:[#allocation5 + $0x20] ss:$0 sm:$0xff]  ;;  %v244_v46 = vld [vmem:[#allocation5 + $0xb8] sm:$0xff]  ;;  %v246_v49 = vld [vmem:[#allocation5 + $0xc8] sm:$0xff]  ;;  %v1297_v31 = vmov 0.5   ;;  %p1242_p5 = por %p1241_p4, %p1240_p3 }
  0x30   :  { %1115 = vmatprep.subr.bf16.mxu0 %v1291_v0  ;;  %1096 = vmatpush3.bf16.msra.mxu1 %v1095_v15  ;;  %v245_v47 = vld [vmem:[#allocation5 + $0xc0] sm:$0xff]  ;;  %v1116_v48 = vpack.c.bf16 %v244_v46, %v243_v45  ;;  %v432_v52 = vld [vmem:[#allocation5 + $0x108] sm:$0xff]  ;;  %v433_v53 = vld [vmem:[#allocation5 + $0x110] sm:$0xff] }
  0x31   :  { %1097 = vmatprep.subr.bf16.mxu1 %v1291_v0  ;;  %v431_v50 = vld [vmem:[#allocation5 + $0x100] sm:$0xff]  ;;  %v1119_v51 = vpack.c.bf16 %v246_v49, %v245_v47  ;;  %v247_v54 = vld [vmem:[#allocation5 + $0xd0] sm:$0xff]  ;;  %v248_v55 = vld [vmem:[#allocation5 + $0xd8] sm:$0xff]  ;;  %p1243_p6 = pnand %p1242_p5, %p1236_p2 }
  0x32   :  { %v1393_v56 = vpack.c.bf16 %v432_v52, %v431_v50  ;;  %v434_v57 = vld [vmem:[#allocation5 + $0x118] sm:$0xff]  ;;  %v1122_v59 = vpack.c.bf16 %v248_v55, %v247_v54  ;;  %v249_v60 = vld [vmem:[#allocation5 + $0xe0] sm:$0xff]  ;;  %v250_v61 = vld [vmem:[#allocation5 + $0xe8] sm:$0xff] }
  0x33   :  { %v1396_v58 = vpack.c.bf16 %v434_v57, %v433_v53  ;;  %v1125_v62 = vpack.c.bf16 %v250_v61, %v249_v60  ;;  %v251_v63 = vld [vmem:[#allocation5 + $0xf0] sm:$0x3f]  ;;  %v895_v3 = vld [vmem:[#allocation5 + $0xa8] ss:$0 sm:$0xff]  ;;  %v337_v10 = vld [vmem:[#allocation5 + $0x120] sm:$0xff] }
  0x34   :  { %1099 = vmatpush3.bf16.msra.mxu1 %v1098_v18  ;;  %v338_v11 = vld [vmem:[#allocation5 + $0x128] sm:$0xff]  ;;  %v339_v14 = vld [vmem:[#allocation5 + $0x130] sm:$0xff]  ;;  %v340_v15 = vld [vmem:[#allocation5 + $0x138] sm:$0xff] }
  0x35   :  { %1100 = vmatprep.subr.bf16.mxu1 %v1291_v0  ;;  %v1128_v12 = vpack.c.bf16 %v338_v11, %v337_v10  ;;  %v1131_v17 = vpack.c.bf16 %v340_v15, %v339_v14  ;;  %v896_v20 = vld [vmem:[#allocation5 + $0xf8] ss:$0 sm:$0xff]  ;;  %v899_v26 = vld [vmem:[#allocation5 + $0x140] ss:$0 sm:$0xff] }
  0x38   :  { %1102 = vmatpush3.bf16.msra.mxu1 %v1101_v21  ;;  %v335_v21 = vlaneseq }
  0x39   :  { %1103 = vmatprep.subr.bf16.mxu1 %v1291_v0 }
  0x3a   :  { %v336_v25 = vand.u32 127, %v335_v21 }
  0x3c   :  { %1105 = vmatpush3.bf16.msra.mxu1 %v1104_v24  ;;  %vm426_vm6 = vcmp.ge.s32.totalorder %v336_v25, 64  ;;  %vm427_vm7 = vcmp.lt.s32.totalorder %v336_v25, 96  ;;  %vm422_vm9 = vcmp.lt.s32.totalorder %v336_v25, 16 }
  0x3d   :  { %1106 = vmatprep.subr.bf16.mxu1 %v1291_v0  ;;  %vm428_vm8 = vmand %vm426_vm6, %vm427_vm7 }
  0x3e   :  { %v1432_v32 = vsel %vm428_vm8, 1.0, %v1297_v31 }
  0x40   :  { %1108 = vmatpush3.bf16.msra.mxu1 %v1107_v27 }
  0x41   :  { %1109 = vmatprep.subr.bf16.mxu1 %v1291_v0 }
  0x44   :  { %1111 = vmatpush3.bf16.msra.mxu1 %v1110_v30 }
  0x45   :  { %1112 = vmatprep.subr.bf16.mxu1 %v1291_v0 }
  0x48   :  { %1114 = vmatpush3.bf16.msra.mxu1 %v1113_v33 }
  0x49   :  { %1133 = vmatprep.subr.bf16.mxu1 %v1291_v0 }
  0x9c   :  { %v1369_v9 = vpop.permute.xlu0 %55  ;;  %v235_v8 = vpop.permute.xlu1 %234 }
  0x9d   :  { %972 = vmatmul.mubr.msk.f32.vlgmr.msra.gmra.mrb[0].mxu0 %vm57_vm1, %v1369_v9 }
  0x9e   :  { %1027 = vmatprep.mubr.msk.f32.mxu0 %vm1292_vm0, %v1293_v1  ;;  %1117 = vmatpush3.bf16.msra.mxu0 %v1116_v48 }
  0x9f   :  { %1118 = vmatprep.subr.bf16.mxu0 %v1291_v0 }
  0xa2   :  { %1120 = vmatpush3.bf16.msra.mxu0 %v1119_v51 }
  0xa3   :  { %1121 = vmatprep.subr.bf16.mxu0 %v1291_v0 }
  0xa6   :  { %1123 = vmatpush3.bf16.msra.mxu0 %v1122_v59 }
  0xa7   :  { %1124 = vmatprep.subr.bf16.mxu0 %v1291_v0 }
  0xaa   :  { %1126 = vmatpush3.bf16.msra.mxu0 %v1125_v62 }
  0xab   :  { %1025 = vmatprep.subr.mxu0 %v1293_v1 }
  0xae   :  { %1026 = vmatpush3.msk.msra.mxu0 %vm261_vm3, %v251_v63 }
  0xaf   :  { %1127 = vmatprep.subr.bf16.mxu0 %v1291_v0 }
 0x170   :  { %v126_v35 = vpop.f32.mrb[0].mxu0 }
 0x171   :  { %v127_v36 = vadd.f32 %v893_v34, %v126_v35  ;;  %v973_v37 = vpop.f32.mrb[1].mxu0  ;;  %v1434_v34 = vsel %vm428_vm8, 0.0, %v1297_v31 }
 0x173   :  { %133 = vrot.lane.b32.xlu0 %v127_v36, %s1294_s2  ;;  %v130_v38 = vadd.f32 1.0, %v127_v36 }
 0x175   :  { %v131_v39 = vmul.f32 %v130_v38, %v1363_v2 }
 0x1e5   :  { %v134_v40 = vpop.permute.xlu0 %133 }
 0x1e6   :  { %v136_v41 = vadd.f32 %v134_v40, %v131_v39 }
 0x1e8   :  { %v137_v42 = vmax.f32 %v136_v41, 0.0 }
 0x1ea   :  { %v138_v43 = vadd.f32 %v137_v42, %v1363_v2  ;;  %v1408_v2 = vld [vmem:[%s1511_s1] sm:$0x3]  ;;  %s1298_s1 = smov 96  }
 0x1ec   :  { %v141_v44 = vsel %vm140_vm2, %v138_v43, %v1369_v9 }
 0x1ed   :  { %1007 = vmatmul.mubr.f32.vlgmr.msra.gmra.mrb[0].mxu1 %v141_v44 }
 0x1ee   :  { %1049 = vmatprep.mubr.msk.f32.mxu1 %vm1292_vm0, %v1293_v1  ;;  %1135 = vmatpush3.bf16.msra.mxu1 %v1393_v56 }
 0x1ef   :  { %1136 = vmatprep.subr.bf16.mxu1 %v1291_v0 }
 0x1f2   :  { %1138 = vmatpush3.bf16.msra.mxu1 %v1396_v58 }
 0x1f3   :  { %1145 = vmatprep.subr.bf16.mxu1 %v1291_v0 }
 0x1f5   :  { %1050 = vmatmul.mubr.msk.f32.vlgmr.msra.gmra.mrb[2].mxu1 %vm57_vm1, %v1408_v2 }
 0x1f6   :  { %1147 = vmatpush3.bf16.msra.mxu1 %v1393_v56  ;;  %1071 = vmatprep.mubr.msk.f32.mxu1 %vm1292_vm0, %v1293_v1 }
 0x1f7   :  { %1148 = vmatprep.subr.bf16.mxu1 %v1291_v0 }
 0x1fa   :  { %1150 = vmatpush3.bf16.msra.mxu1 %v1396_v58 }
 0x2c0   :  { %v229_v4 = vpop.f32.mrb[0].mxu1 }
 0x2c1   :  { %v230_v5 = vadd.f32 %v895_v3, %v229_v4  ;;  %v1008_v6 = vpop.f32.mrb[1].mxu1 }
 0x2c3   :  { %v233_v7 = vmax.f32 %v230_v5, 0.0 }
 0x2c5   :  { %238 = vrot.lane.b32.xlu1 %v233_v7, %s1296_s17 }
 0x2c8   :  { %v505_v18 = vpop.f32.mrb[2].mxu1 }
 0x2c9   :  { %v1051_v19 = vpop.f32.mrb[3].mxu1 }
 0x337   :  { %v239_v13 = vpop.permute.xlu1 %238 }
 0x338   :  { %v242_v16 = vsel %vm241_vm4, %v235_v8, %v239_v13 }
 0x339   :  { %1028 = vmatmul.mubr.msk.f32.vlgmr.msra.gmra.mrb[2].mxu0 %vm257_vm5, %v242_v16 }
 0x33a   :  { %1129 = vmatpush3.bf16.msra.mxu0 %v1128_v12  ;;  %1038 = vmatprep.mubr.msk.f32.mxu0 %vm1292_vm0, %v1293_v1 }
 0x33b   :  { %1130 = vmatprep.subr.bf16.mxu0 %v1291_v0 }
 0x33e   :  { %1132 = vmatpush3.bf16.msra.mxu0 %v1131_v17 }
 0x33f   :  { %1139 = vmatprep.subr.bf16.mxu0 %v1291_v0 }
 0x341   :  { %1039 = vmatmul.mubr.msk.f32.vlgmr.msra.gmra.mrb[4].mxu0 %vm57_vm1, %v1369_v9 }
 0x342   :  { %1141 = vmatpush3.bf16.msra.mxu0 %v1393_v56  ;;  %1060 = vmatprep.mubr.msk.f32.mxu0 %vm1292_vm0, %v1293_v1 }
 0x343   :  { %1142 = vmatprep.subr.bf16.mxu0 %v1291_v0 }
 0x346   :  { %1144 = vmatpush3.bf16.msra.mxu0 %v1396_v58 }
 0x347   :  { %1151 = vmatprep.subr.bf16.mxu0 %v1291_v0 }
 0x40c   :  { %v331_v22 = vpop.f32.mrb[2].mxu0 }
 0x40d   :  { %v1429_v23 = vadd.f32 %v896_v20, %v331_v22  ;;  %v1029_v24 = vpop.f32.mrb[3].mxu0 }
 0x40f   :  { %v509_v9 = vadd.f32 %v505_v18, %v1429_v23 }
 0x411   :  { %1171 = vtanh.f32 %v509_v9 }
 0x414   :  { %v412_v27 = vpop.f32.mrb[4].mxu0 }
 0x415   :  { %v413_v28 = vadd.f32 %v899_v26, %v412_v27  ;;  %v1040_v29 = vpop.f32.mrb[5].mxu0 }
 0x417   :  { %v901_v30 = vmul.f32 -1.442695, %v413_v28 }
 0x419   :  { %1173 = vpow2.f32 %v901_v30 }
 0x41b   :  { %v1172_v33 = vpop.eup %1171 }
 0x41c   :  { %v511_v35 = vmul.f32 %v1172_v33, %v1432_v32 }
 0x41e   :  { %v512_v36 = vadd.f32 %v511_v35, %v1434_v34 }
 0x420   :  { %515 = vrot.lane.b32.xlu0 %v512_v36, %s1294_s2  ;;  %v513_v44 = vmul.f32 %v512_v36, %v1408_v2 }
 0x423   :  { %v1174_v37 = vpop.eup %1173 }
 0x424   :  { %v419_v38 = vadd.f32 1.0, %v1174_v37 }
 0x426   :  { %1175 = vrcp.f32 %v419_v38 }
 0x430   :  { %v1176_v39 = vpop.eup %1175 }
 0x431   :  { %v1439_v40 = vsel %vm422_vm9, %v1176_v39, 1.0 }
 0x492   :  { %v516_v41 = vpop.permute.xlu0 %515 }
 0x493   :  { %v518_v42 = vmul.f32 %v516_v41, %v512_v36 }
 0x495   :  { %v519_v43 = vmul.f32 %v518_v42, %v1439_v40 }
 0x497   :  { %521 = vrot.lane.b32.xlu1 %v519_v43, %s1295_s14 }
 0x509   :  { %v522_v45 = vpop.permute.xlu1 %521 }
 0x50a   :  { %v524_v46 = vadd.f32 %v522_v45, %v513_v44 }
 0x50c   :  { %1177 = vtanh.f32 %v524_v46 }
 0x516   :  { %v1178_v47 = vpop.eup %1177 }
 0x517   :  { %527 = vrot.lane.b32.xlu0 %v1178_v47, %s1294_s2 }
 0x589   :  { %v528_v48 = vpop.permute.xlu0 %527 }
 0x58a   :  { %v530_v49 = vmul.f32 %v528_v48, %v512_v36 }
 0x58c   :  { %532 = vrot.lane.b32.xlu1 %v530_v49, %s1295_s14 }
 0x5fe   :  { %v1446_v50 = vpop.permute.xlu1 %532 }
 0x5ff   :  { %1061 = vmatmul.mubr.msk.f32.vlgmr.msra.gmra.mrb[6].mxu0 %vm57_vm1, %v1446_v50 }
 0x600   :  { %1153 = vmatpush3.bf16.msra.mxu0 %v1393_v56  ;;  %1082 = vmatprep.mubr.msk.f32.mxu0 %vm1292_vm0, %v1293_v1 }
 0x601   :  { %1154 = vmatprep.subr.bf16.mxu0 %v1291_v0  ;;  %v614_v0 = vrot.slane %v524_v46, 6 }
 0x604   :  { %1156 = vmatpush3.bf16.msra.mxu0 %v1396_v58 }
 0x6d2   :  { %v602_v51 = vpop.f32.mrb[6].mxu0 }
 0x6d3   :  { %v607_v52 = vrot.slane %v602_v51, 6  ;;  %v1062_v53 = vpop.f32.mrb[7].mxu0 }
 0x6d5   :  { %v609_v54 = vadd.f32 %v607_v52, %v1429_v23 }
 0x6d7   :  { %1179 = vtanh.f32 %v609_v54 }
 0x6e1   :  { %v1180_v55 = vpop.eup %1179 }
 0x6e2   :  { %v611_v57 = vmul.f32 %v1180_v55, %v1432_v32 }
 0x6e4   :  { %v612_v59 = vadd.f32 %v611_v57, %v1434_v34 }
 0x6e6   :  { %618 = vrot.lane.b32.xlu0 %v612_v59, %s1294_s2  ;;  %v616_v58 = vmul.f32 %v614_v0, %v612_v59 }
 0x758   :  { %v619_v56 = vpop.permute.xlu0 %618 }
 0x759   :  { %v621_v60 = vmul.f32 %v619_v56, %v612_v59 }
 0x75b   :  { %v622_v1 = vmul.f32 %v621_v60, %v1439_v40 }
 0x75d   :  { %624 = vrot.lane.b32.xlu1 %v622_v1, %s1295_s14 }
 0x7cf   :  { %v625_v61 = vpop.permute.xlu1 %624 }
 0x7d0   :  { %v627_v62 = vadd.f32 %v625_v61, %v616_v58 }
 0x7d2   :  { %1181 = vtanh.f32 %v627_v62  ;;  %v718_v17 = vrot.slane %v627_v62, 6 }
 0x7dc   :  { %v1182_v63 = vpop.eup %1181 }
 0x7dd   :  { %630 = vrot.lane.b32.xlu0 %v1182_v63, %s1294_s2 }
 0x84f   :  { %v631_v2 = vpop.permute.xlu0 %630 }
 0x850   :  { %v633_v3 = vmul.f32 %v631_v2, %v612_v59 }
 0x852   :  { %v635_v4 = vrot.slane %v633_v3, 2 }
 0x854   :  { %636 = vrot.lane.b32.xlu1 %v635_v4, %s1295_s14 }
 0x8c6   :  { %v637_v5 = vpop.permute.xlu1 %636 }
 0x8c7   :  { %1072 = vmatmul.mubr.msk.f32.vlgmr.msra.gmra.mrb[4].mxu1 %vm57_vm1, %v637_v5 }
 0x99a   :  { %v706_v6 = vpop.f32.mrb[4].mxu1 }
 0x99b   :  { %v711_v7 = vrot.slane %v706_v6, 4  ;;  %v1073_v8 = vpop.f32.mrb[5].mxu1 }
 0x99d   :  { %v713_v10 = vadd.f32 %v711_v7, %v1429_v23 }
 0x99f   :  { %1183 = vtanh.f32 %v713_v10 }
 0x9a9   :  { %v1184_v11 = vpop.eup %1183 }
 0x9aa   :  { %v715_v12 = vmul.f32 %v1184_v11, %v1432_v32 }
 0x9ac   :  { %v716_v13 = vadd.f32 %v715_v12, %v1434_v34 }
 0x9ae   :  { %722 = vrot.lane.b32.xlu0 %v716_v13, %s1294_s2  ;;  %v720_v18 = vmul.f32 %v718_v17, %v716_v13 }
 0xa20   :  { %v723_v14 = vpop.permute.xlu0 %722 }
 0xa21   :  { %v725_v15 = vmul.f32 %v723_v14, %v716_v13 }
 0xa23   :  { %v726_v16 = vmul.f32 %v725_v15, %v1439_v40 }
 0xa25   :  { %728 = vrot.lane.b32.xlu1 %v726_v16, %s1295_s14 }
 0xa97   :  { %v729_v19 = vpop.permute.xlu1 %728 }
 0xa98   :  { %v731_v20 = vadd.f32 %v729_v19, %v720_v18 }
 0xa9a   :  { %1185 = vtanh.f32 %v731_v20  ;;  %v822_v38 = vrot.slane %v731_v20, 6 }
 0xaa4   :  { %v1186_v21 = vpop.eup %1185 }
 0xaa5   :  { %734 = vrot.lane.b32.xlu0 %v1186_v21, %s1294_s2 }
 0xb17   :  { %v735_v22 = vpop.permute.xlu0 %734 }
 0xb18   :  { %v737_v24 = vmul.f32 %v735_v22, %v716_v13 }
 0xb1a   :  { %v739_v9 = vrot.slane %v737_v24, 4 }
 0xb1c   :  { %740 = vrot.lane.b32.xlu1 %v739_v9, %s1295_s14 }
 0xb8e   :  { %v741_v25 = vpop.permute.xlu1 %740 }
 0xb8f   :  { %1083 = vmatmul.mubr.msk.f32.vlgmr.msra.gmra.mrb[8].mxu0 %vm57_vm1, %v741_v25 }
 0xc62   :  { %v810_v26 = vpop.f32.mrb[8].mxu0 }
 0xc63   :  { %v815_v27 = vrot.slane %v810_v26, 2  ;;  %v1084_v28 = vpop.f32.mrb[9].mxu0 }
 0xc65   :  { %v817_v29 = vadd.f32 %v815_v27, %v1429_v23 }
 0xc67   :  { %1187 = vtanh.f32 %v817_v29 }
 0xc71   :  { %v1188_v30 = vpop.eup %1187 }
 0xc72   :  { %v819_v31 = vmul.f32 %v1188_v30, %v1432_v32 }
 0xc74   :  { %v820_v33 = vadd.f32 %v819_v31, %v1434_v34 }
 0xc76   :  { %826 = vrot.lane.b32.xlu0 %v820_v33, %s1294_s2  ;;  %v824_v39 = vmul.f32 %v822_v38, %v820_v33 }
 0xce8   :  { %v827_v35 = vpop.permute.xlu0 %826 }
 0xce9   :  { %v829_v36 = vmul.f32 %v827_v35, %v820_v33 }
 0xceb   :  { %v830_v37 = vmul.f32 %v829_v36, %v1439_v40 }
 0xced   :  { %832 = vrot.lane.b32.xlu1 %v830_v37, %s1295_s14 }
 0xcf1   :  { %843 = vrot.lane.b32.xlu1 %v635_v4, %s1294_s2 }
 0xd5f   :  { %v833_v41 = vpop.permute.xlu1 %832 }
 0xd60   :  { %v835_v23 = vadd.f32 %v833_v41, %v824_v39 }
 0xd62   :  { %1189 = vtanh.f32 %v835_v23 }
 0xd63   :  { %v844_v34 = vpop.permute.xlu1 %843 }
 0xd64   :  { %v852_v44 = vsel %vm57_vm1, %v1446_v50, %v844_v34 }
 0xd6c   :  { %v1190_v42 = vpop.eup %1189 }
 0xd6d   :  { %838 = vrot.lane.b32.xlu0 %v1190_v42, %s1294_s2 }
 0xd71   :  { %846 = vrot.lane.b32.xlu0 %v739_v9, %s1298_s1 }
 0xddf   :  { %v839_v32 = vpop.permute.xlu0 %838 }
 0xde0   :  { %v841_v43 = vmul.f32 %v839_v32, %v820_v33 }
 0xde2   :  { %v850_v40 = vrot.slane %v841_v43, 6  ;;  %857 = vrot.lane.b32.xlu1 %v841_v43, %s1295_s14 }
 0xde3   :  { %v847_v45 = vpop.permute.xlu0 %846 }
 0xde4   :  { %v853_v46 = vsel %vm140_vm2, %v852_v44, %v847_v45 }
 0xde5   :  { %v855_v47 = vsel %vm854_vm10, %v853_v46, %v850_v40 }
 0xde6   :  { %856 = vst [vmem:[#allocation7] sm:$0x3] %v855_v47 }
 0xde7   :  { %1246 = shalt.err (!%p1243_p6)
}
 0xde8   :  { %s1247_s23 = scalar_lea.hbm %s1513_s3, 32 }
 0xde9   :  { %p1248_p7 = scmp.ne.s32.totalorder %s1513_s3, %s1247_s23  ;;  %p1251_p8 = scmp.lt.u32.totalorder %s1247_s23, %s1513_s3 }
 0xdeb   :  { %p1253_p9 = pnand %p1251_p8, %p1248_p7 }
 0xded   :  { %1256 = shalt.err (!%p1253_p9)
}
 0xdee   :  { %872 = dma.vmem_to_hbm [thread:$0]  %s870_s19, 32, %s1513_s3, [#allocation4]   ;;  %vm861_vm11 = vcmask 523270  }
 0xdef   :  { %s1300_s30 = smov [#allocation8]  }
 0xdf0   :  { %s879_s5 = sshll.u32 %s1300_s30, 4  ;;  %s880_s5 = int_to_ptr.vmem [resolvable:$true] %s879_s5 }
 0xdf1   :  { %s1257_s6 = scalar_lea.vmem %s880_s5, 32  ;;  %p1262_p11 = scmp.lt.s32.totalorder %s880_s5, %s880_s5 }
 0xdf2   :  { %p1258_p10 = scmp.ne.s32.totalorder %s880_s5, %s1257_s6  ;;  %p1263_p12 = scmp.lt.s32.totalorder %s1257_s6, %s1257_s6 }
 0xdf4   :  { %p1264_p13 = por %p1263_p12, %p1262_p11 }
 0xdf6   :  { %p1265_p0 = pnand %p1264_p13, %p1258_p10 }
 0xe54   :  { %v858_v48 = vpop.permute.xlu1 %857 }
 0xe55   :  { %v860_v49 = vsel %vm57_vm1, %v858_v48, %v835_v23 }
 0xe56   :  { %862 = vst.msk [vmem:[#allocation8 - $0x6] sm:$0xc0] %vm861_vm11, %v860_v49 }
 0xe57   :  { %1268 = shalt.err (!%p1265_p0)
}
 0xe58   :  { %s1269_s9 = scalar_lea.hbm %s1514_s4, 32 }
 0xe59   :  { %p1270_p1 = scmp.ne.s32.totalorder %s1514_s4, %s1269_s9  ;;  %p1273_p2 = scmp.lt.u32.totalorder %s1269_s9, %s1514_s4 }
 0xe5b   :  { %p1275_p3 = pnand %p1273_p2, %p1270_p1 }
 0xe5d   :  { %1278 = shalt.err (!%p1275_p3)
}
 0xe5e   :  { %882 = dma.vmem_to_hbm [thread:$0]  %s880_s5, 32, %s1514_s4, [#allocation9]  }
 0xe5f   :  { %1283 = dma.done.wait [#allocation4], 32  }
 0xe60   :  { %1284 = vsyncadd [#allocation4], 4294967264 }
 0xe61   :  { %1285 = dma.done.wait [#allocation9], 32  }
 0xe62   :  { %1286 = vsyncadd [#allocation9], 4294967264 }
 0xe63   :  { %889 = vsyncpa [#allocation3], 1 }
 0xe64   :  { %890 = vsyncpa [#allocation6], 1 }
 0xe65   :  { %891 = vsyncpa [#allocation4], 1 }
 0xe66   :  { %892 = vsyncpa [#allocation9], 1 }

</bundles_post_ra>
